<compile_context>
chip_gen: v6e
topology: v6e:2x2x1
jax: 0.10.0
libtpu: 0.0.40
codegen_flags: <defaults>
</compile_context>

<pallas_src>
import jax
import jax.numpy as jnp
from jax.experimental import pallas as pl
from jax.experimental.pallas import tpu as pltpu


_LANE = 128       # output channels padded to a multiple of the lane width
_SUBLANE = 8


def _round_up(x, m):
    return (x + m - 1) // m * m


def _gemm_bias_kernel(a_ref, w_ref, b_ref, o_ref):
    """One M-tile of: out = patches @ W + bias (bf16 operands, f32 accumulate)."""
    acc = jnp.dot(a_ref[...], w_ref[...], preferred_element_type=jnp.float32)
    o_ref[...] = (acc + b_ref[...]).astype(o_ref.dtype)


def _gemm_bias_relu_kernel(a_ref, w_ref, b_ref, o_ref, r_ref):
    """Same GEMM + bias, additionally emitting relu(out) in bf16 for the next level."""
    acc = jnp.dot(a_ref[...], w_ref[...], preferred_element_type=jnp.float32)
    acc = acc + b_ref[...]
    o_ref[...] = acc.astype(o_ref.dtype)
    r_ref[...] = jnp.maximum(acc, 0.0).astype(r_ref.dtype)


def _im2col_k3_s2_p1(x):
    """x: (N,H,W,C) -> patches (N*Ho*Wo, 9*C) with tap order (kh, kw, c)."""
    N, H, W, C = x.shape
    Ho = (H - 1) // 2 + 1
    Wo = (W - 1) // 2 + 1
    xp = jnp.pad(x, ((0, 0), (1, 1), (1, 1), (0, 0)))
    taps = []
    for kh in range(3):
        for kw in range(3):
            taps.append(xp[:, kh:kh + 2 * Ho:2, kw:kw + 2 * Wo:2, :])
    patches = jnp.stack(taps, axis=3)                      # (N,Ho,Wo,9,C)
    return patches.reshape(N * Ho * Wo, 9 * C), (N, Ho, Wo)


def _tile_vmem_bytes(tm, K, cout_p, out_itemsizes):
    """Double-buffered patch/out tiles + resident weight & bias, in bytes."""
    return (2 * tm * K * 2                       # bf16 patch tile, 2 buffers
            + K * cout_p * 2                     # resident bf16 weight
            + _SUBLANE * cout_p * 4              # resident f32 bias (padded)
            + sum(2 * tm * cout_p * s for s in out_itemsizes))


def _choose_tm(m_pad, K, cout_p, out_itemsizes, budget=20 << 20):
    """Largest 128-aligned tile dividing m_pad that fits the VMEM budget.

    Prefers tiles giving >= 2 grid steps so both v7x TensorCores get work.
    """
    fitting = [tm for tm in (512, 384, 256, 128)
               if m_pad % tm == 0
               and _tile_vmem_bytes(tm, K, cout_p, out_itemsizes) <= budget]
    for tm in fitting:
        if m_pad // tm >= 2:
            return tm
    return fitting[0] if fitting else 128


def conv3x3_s2_p1(x, w, b, *, out_dtype=jnp.float32, emit_relu_bf16=False):
    """3x3 / stride-2 / pad-1 conv. x:(N,H,W,Cin), w:(3,3,Cin,Cout), b:(Cout,).

    If emit_relu_bf16, also returns relu(conv(x)) cast to bf16 (fused epilogue),
    ready to feed the next level's im2col without re-reading the f32 output.
    """
    patches, (N, Ho, Wo) = _im2col_k3_s2_p1(x)
    M, K = patches.shape
    cin, cout = w.shape[2], w.shape[3]
    out_bytes = jnp.dtype(out_dtype).itemsize

    # Lane-dense output (Cout -> multiple of 128) and 128-aligned, padded M.
    cout_p = _round_up(cout, _LANE)
    m_pad = _round_up(M, _LANE)
    out_itemsizes = [out_bytes] + ([2] if emit_relu_bf16 else [])
    tm = _choose_tm(m_pad, K, cout_p, out_itemsizes)
    grid = (m_pad // tm,)

    # Feed the MXU bf16; keep the bias in f32 for the epilogue add.
    patches = jnp.pad(patches.astype(jnp.bfloat16), ((0, m_pad - M), (0, 0)))
    w2 = jnp.pad(w.reshape(9 * cin, cout).astype(jnp.bfloat16),
                 ((0, 0), (0, cout_p - cout)))
    b2 = jnp.pad(b.astype(jnp.float32).reshape(1, cout),
                 ((0, 0), (0, cout_p - cout)))

    vmem_need = _tile_vmem_bytes(tm, K, cout_p, out_itemsizes)
    vmem_limit = int(min(max(2 * vmem_need, 16 << 20), 40 << 20))

    out_write_bytes = sum(m_pad * cout_p * s for s in out_itemsizes)
    cost = pl.CostEstimate(
        flops=2 * m_pad * K * cout_p,
        transcendentals=0,
        bytes_accessed=(m_pad * K * 2 + K * cout_p * 2 + cout_p * 4
                        + out_write_bytes),
    )

    in_specs = [
        pl.BlockSpec((tm, K), lambda i: (i, 0)),       # patches tile
        pl.BlockSpec((K, cout_p), lambda i: (0, 0)),   # resident weight
        pl.BlockSpec((1, cout_p), lambda i: (0, 0)),   # resident bias
    ]

    if emit_relu_bf16:
        kernel = _gemm_bias_relu_kernel
        out_shape = (jax.ShapeDtypeStruct((m_pad, cout_p), out_dtype),
                     jax.ShapeDtypeStruct((m_pad, cout_p), jnp.bfloat16))
        out_specs = [pl.BlockSpec((tm, cout_p), lambda i: (i, 0)),
                     pl.BlockSpec((tm, cout_p), lambda i: (i, 0))]
    else:
        kernel = _gemm_bias_kernel
        out_shape = jax.ShapeDtypeStruct((m_pad, cout_p), out_dtype)
        out_specs = pl.BlockSpec((tm, cout_p), lambda i: (i, 0))

    result = pl.pallas_call(
        kernel,
        out_shape=out_shape,
        grid_spec=pltpu.PrefetchScalarGridSpec(
            num_scalar_prefetch=0,
            grid=grid,
            in_specs=in_specs,
            out_specs=out_specs,
        ),
        compiler_params=pltpu.CompilerParams(
            dimension_semantics=("parallel",),
            vmem_limit_bytes=vmem_limit),
        cost_estimate=cost,
    )(patches, w2, b2)

    if emit_relu_bf16:
        out, relu_out = result
        out = out[:M, :cout].reshape(N, Ho, Wo, cout)
        relu_out = relu_out[:M, :cout].reshape(N, Ho, Wo, cout)
        return out, relu_out

    return result[:M, :cout].reshape(N, Ho, Wo, cout)


def init_last_level_p6p7_params(key, in_channels, out_channels):
    """c2_xavier_fill == kaiming_uniform_(a=1) on weights, zero bias."""
    k6, k7 = jax.random.split(key)

    def _init(k, cin, cout):
        fan_in = cin * 3 * 3
        bound = (3.0 / fan_in) ** 0.5                 # sqrt(6 / ((1+1)*fan_in))
        w = jax.random.uniform(k, (3, 3, cin, cout), jnp.float32, -bound, bound)
        b = jnp.zeros((cout,), jnp.float32)
        return w, b

    p6_w, p6_b = _init(k6, in_channels, out_channels)
    p7_w, p7_b = _init(k7, out_channels, out_channels)
    return {"p6_w": p6_w, "p6_b": p6_b, "p7_w": p7_w, "p7_b": p7_b}


@jax.jit
def last_level_p6p7(x_nhwc, params):
    """Forward of LastLevelP6P7: p6 = conv(x); p7 = conv(relu(p6))."""
    p6, p6_relu_bf16 = conv3x3_s2_p1(
        x_nhwc, params["p6_w"], params["p6_b"],
        out_dtype=x_nhwc.dtype, emit_relu_bf16=True)
    p7 = conv3x3_s2_p1(
        p6_relu_bf16, params["p7_w"], params["p7_b"], out_dtype=x_nhwc.dtype)
    return [p6, p7]


def _reference(x_nhwc, params):
    dn = ("NHWC", "HWIO", "NHWC")
    p6 = jax.lax.conv_general_dilated(
        x_nhwc, params["p6_w"], (2, 2), ((1, 1), (1, 1)),
        dimension_numbers=dn) + params["p6_b"]
    p7 = jax.lax.conv_general_dilated(
        jnp.maximum(p6, 0.0), params["p7_w"], (2, 2), ((1, 1), (1, 1)),
        dimension_numbers=dn) + params["p7_b"]
    return [p6, p7]


if __name__ == "__main__":
    key = jax.random.PRNGKey(0)
    kx, kp = jax.random.split(key)

    N, C_IN, H, W = 2, 4, 16, 16
    C_OUT = 8

    # PyTorch-style NCHW input, transposed to the kernel's NHWC layout.
    x_nchw = jax.random.normal(kx, (N, C_IN, H, W), jnp.float32)
    x_nhwc = jnp.transpose(x_nchw, (0, 2, 3, 1))

    params = init_last_level_p6p7_params(kp, C_IN, C_OUT)

    p6, p7 = last_level_p6p7(x_nhwc, params)
    p6, p7 = jax.block_until_ready(p6), jax.block_until_ready(p7)

    assert p6.shape == (N, H // 2, W // 2, C_OUT)
    assert p7.shape == (N, H // 4, W // 4, C_OUT)

    r6, r7 = _reference(x_nhwc, params)
    assert jnp.allclose(p6, r6, atol=2e-2, rtol=2e-2)
    assert jnp.allclose(p7, r7, atol=2e-2, rtol=2e-2)

    print("KERNEL_OK")
</pallas_src>

<mosaic_0001>
module attributes {stable_mosaic.version = 11 : i64} {
  func.func @_gemm_bias_relu_kernel(%arg0: i32, %arg1: memref<128x36xbf16, #tpu.memory_space<vmem>>, %arg2: memref<36x128xbf16, #tpu.memory_space<vmem>>, %arg3: memref<1x128xf32, #tpu.memory_space<vmem>>, %arg4: memref<128x128xf32, #tpu.memory_space<vmem>>, %arg5: memref<128x128xbf16, #tpu.memory_space<vmem>>) attributes {dimension_semantics = [#tpu.dimension_semantics<parallel>], iteration_bounds = array<i64: 1>, scalar_prefetch = 0 : i64, scratch_operands = 0 : i64, tpu.core_type = #tpu.core_type<tc>, window_params = [{transform_indices = @transform_0, window_bounds = array<i64: 128, 36>}, {pipeline_mode = #tpu.pipeline_mode<synchronous>, transform_indices = @transform_1, window_bounds = array<i64: 36, 128>}, {pipeline_mode = #tpu.pipeline_mode<synchronous>, transform_indices = @transform_2, window_bounds = array<i64: 1, 128>}, {transform_indices = @transform_3, window_bounds = array<i64: 128, 128>}, {transform_indices = @transform_4, window_bounds = array<i64: 128, 128>}]} {
    %c0 = arith.constant 0 : index
    %c0_0 = arith.constant 0 : index
    %0 = vector.load %arg1[%c0, %c0_0] : memref<128x36xbf16, #tpu.memory_space<vmem>>, vector<128x36xbf16>
    %c0_1 = arith.constant 0 : index
    %c0_2 = arith.constant 0 : index
    %1 = vector.load %arg2[%c0_1, %c0_2] : memref<36x128xbf16, #tpu.memory_space<vmem>>, vector<36x128xbf16>
    %cst = arith.constant dense<0.000000e+00> : vector<128x128xf32>
    %2 = tpu.matmul %0, %1, %cst {dimension_numbers = #tpu.dot_dimension_numbers<[1], [0], [0], [1], [0, 0, 1, 1], [], []>} : vector<128x36xbf16>, vector<36x128xbf16>, vector<128x128xf32> -> vector<128x128xf32>
    %c0_3 = arith.constant 0 : index
    %c0_4 = arith.constant 0 : index
    %3 = vector.load %arg3[%c0_3, %c0_4] : memref<1x128xf32, #tpu.memory_space<vmem>>, vector<1x128xf32>
    %4 = vector.broadcast %3 : vector<1x128xf32> to vector<128x128xf32>
    %5 = arith.addf %2, %4 : vector<128x128xf32>
    %c0_5 = arith.constant 0 : index
    %c0_6 = arith.constant 0 : index
    %6 = vector.load %arg4[%c0_5, %c0_6] : memref<128x128xf32, #tpu.memory_space<vmem>>, vector<128x128xf32>
    tpu.vector_store %arg4[%c0_5, %c0_6], %5 {strides = array<i32>} : memref<128x128xf32, #tpu.memory_space<vmem>>, vector<128x128xf32>,
    %cst_7 = arith.constant 0.000000e+00 : f32
    %7 = vector.broadcast %cst_7 : f32 to vector<128x128xf32>
    %8 = arith.maximumf %5, %7 : vector<128x128xf32>
    %9 = arith.truncf %8 : vector<128x128xf32> to vector<128x128xbf16>
    %c0_8 = arith.constant 0 : index
    %c0_9 = arith.constant 0 : index
    %10 = vector.load %arg5[%c0_8, %c0_9] : memref<128x128xbf16, #tpu.memory_space<vmem>>, vector<128x128xbf16>
    tpu.vector_store %arg5[%c0_8, %c0_9], %9 {strides = array<i32>} : memref<128x128xbf16, #tpu.memory_space<vmem>>, vector<128x128xbf16>,
    return
  }
  func.func @transform_0(%arg0: i32) -> (i32, i32) {
    %c0_i32 = arith.constant 0 : i32
    %c0_i32_0 = arith.constant 0 : i32
    return %arg0, %c0_i32 : i32, i32
  }
  func.func @transform_1(%arg0: i32) -> (i32, i32) {
    %c0_i32 = arith.constant 0 : i32
    %c0_i32_0 = arith.constant 0 : i32
    %c0_i32_1 = arith.constant 0 : i32
    return %c0_i32, %c0_i32_0 : i32, i32
  }
  func.func @transform_2(%arg0: i32) -> (i32, i32) {
    %c0_i32 = arith.constant 0 : i32
    %c0_i32_0 = arith.constant 0 : i32
    %c0_i32_1 = arith.constant 0 : i32
    return %c0_i32, %c0_i32_0 : i32, i32
  }
  func.func @transform_3(%arg0: i32) -> (i32, i32) {
    %c0_i32 = arith.constant 0 : i32
    %c0_i32_0 = arith.constant 0 : i32
    return %arg0, %c0_i32 : i32, i32
  }
  func.func @transform_4(%arg0: i32) -> (i32, i32) {
    %c0_i32 = arith.constant 0 : i32
    %c0_i32_0 = arith.constant 0 : i32
    return %arg0, %c0_i32 : i32, i32
  }
}

module attributes {stable_mosaic.version = 11 : i64} {
  func.func @_gemm_bias_kernel(%arg0: i32, %arg1: memref<128x72xbf16, #tpu.memory_space<vmem>>, %arg2: memref<72x128xbf16, #tpu.memory_space<vmem>>, %arg3: memref<1x128xf32, #tpu.memory_space<vmem>>, %arg4: memref<128x128xf32, #tpu.memory_space<vmem>>) attributes {dimension_semantics = [#tpu.dimension_semantics<parallel>], iteration_bounds = array<i64: 1>, scalar_prefetch = 0 : i64, scratch_operands = 0 : i64, tpu.core_type = #tpu.core_type<tc>, window_params = [{transform_indices = @transform_0, window_bounds = array<i64: 128, 72>}, {pipeline_mode = #tpu.pipeline_mode<synchronous>, transform_indices = @transform_1, window_bounds = array<i64: 72, 128>}, {pipeline_mode = #tpu.pipeline_mode<synchronous>, transform_indices = @transform_2, window_bounds = array<i64: 1, 128>}, {transform_indices = @transform_3, window_bounds = array<i64: 128, 128>}]} {
    %c0 = arith.constant 0 : index
    %c0_0 = arith.constant 0 : index
    %0 = vector.load %arg1[%c0, %c0_0] : memref<128x72xbf16, #tpu.memory_space<vmem>>, vector<128x72xbf16>
    %c0_1 = arith.constant 0 : index
    %c0_2 = arith.constant 0 : index
    %1 = vector.load %arg2[%c0_1, %c0_2] : memref<72x128xbf16, #tpu.memory_space<vmem>>, vector<72x128xbf16>
    %cst = arith.constant dense<0.000000e+00> : vector<128x128xf32>
    %2 = tpu.matmul %0, %1, %cst {dimension_numbers = #tpu.dot_dimension_numbers<[1], [0], [0], [1], [0, 0, 1, 1], [], []>} : vector<128x72xbf16>, vector<72x128xbf16>, vector<128x128xf32> -> vector<128x128xf32>
    %c0_3 = arith.constant 0 : index
    %c0_4 = arith.constant 0 : index
    %3 = vector.load %arg3[%c0_3, %c0_4] : memref<1x128xf32, #tpu.memory_space<vmem>>, vector<1x128xf32>
    %4 = vector.broadcast %3 : vector<1x128xf32> to vector<128x128xf32>
    %5 = arith.addf %2, %4 : vector<128x128xf32>
    %c0_5 = arith.constant 0 : index
    %c0_6 = arith.constant 0 : index
    %6 = vector.load %arg4[%c0_5, %c0_6] : memref<128x128xf32, #tpu.memory_space<vmem>>, vector<128x128xf32>
    tpu.vector_store %arg4[%c0_5, %c0_6], %5 {strides = array<i32>} : memref<128x128xf32, #tpu.memory_space<vmem>>, vector<128x128xf32>,
    return
  }
  func.func @transform_0(%arg0: i32) -> (i32, i32) {
    %c0_i32 = arith.constant 0 : i32
    %c0_i32_0 = arith.constant 0 : i32
    return %arg0, %c0_i32 : i32, i32
  }
  func.func @transform_1(%arg0: i32) -> (i32, i32) {
    %c0_i32 = arith.constant 0 : i32
    %c0_i32_0 = arith.constant 0 : i32
    %c0_i32_1 = arith.constant 0 : i32
    return %c0_i32, %c0_i32_0 : i32, i32
  }
  func.func @transform_2(%arg0: i32) -> (i32, i32) {
    %c0_i32 = arith.constant 0 : i32
    %c0_i32_0 = arith.constant 0 : i32
    %c0_i32_1 = arith.constant 0 : i32
    return %c0_i32, %c0_i32_0 : i32, i32
  }
  func.func @transform_3(%arg0: i32) -> (i32, i32) {
    %c0_i32 = arith.constant 0 : i32
    %c0_i32_0 = arith.constant 0 : i32
    return %arg0, %c0_i32 : i32, i32
  }
}

</mosaic_0001>

<bundles_post_ra>
// kernel: last_level_p6p7.2
= control target key start
LH: loop header
LB: loop body
LE: loop exit
PB: predicated region body
PF: predicated region fallthrough
CT: control target
= control target key end

     0   :  { %vm126_vm0 = vcmask 1041408   ;;  %vm101_vm1 = vcmask 293888   ;;  %s652_s0 = inlined_call_operand.vmem [shape: bf16[128,36], index: 0, kind: input, shape index: {}]   ;;  %s653_s1 = inlined_call_operand.vmem [shape: bf16[36,128], index: 1, kind: input, shape index: {}]   ;;  %s654_s2 = inlined_call_operand.vmem [shape: f32[1,128], index: 2, kind: input, shape index: {}]   ;;  %s655_s3 = inlined_call_operand.hbm [shape: f32[128,128], index: 3, kind: output, shape index: {0}]   ;;  %s656_s4 = inlined_call_operand.vmem [shape: bf16[128,128], index: 4, kind: output, shape index: {1}]  }
   0x1   :  { %v502_v0 = vld [vmem:[%s653_s1 + $0x10] ss:$0 sps:$4 sm:$0x33]   ;;  %v503_v1 = vld [vmem:[%s653_s1 + $0x8] sm:$0xff]   ;;  %v504_v3 = vld [vmem:[%s653_s1] sm:$0xff]  }
   0x2   :  { %497 = vmatprep.subr.msk.bf16.mxu0 %vm126_vm0, %v502_v0  ;;  %498 = vmatprep.subr.msk.bf16.mxu1 %vm126_vm0, %v502_v0  ;;  %v128_v2 = vsel %vm126_vm0, %v502_v0, 0  ;;  %v505_v4 = vld [vmem:[%s652_s0] sm:$0xff]   ;;  %v507_v6 = vld [vmem:[%s652_s0 + $0x8] sm:$0xff]   ;;  %v509_v8 = vld [vmem:[%s652_s0 + $0x10] sm:$0xff]  }
   0x3   :  { %470 = vmatpush3.bf16.msra.mxu0 %v128_v2  ;;  %494 = vmatpush3.bf16.msra.mxu1 %v128_v2  ;;  %v506_v5 = vld [vmem:[%s652_s0 + $0x20] sm:$0xff]   ;;  %v508_v7 = vld [vmem:[%s652_s0 + $0x28] sm:$0xff]   ;;  %v510_v9 = vld [vmem:[%s652_s0 + $0x30] sm:$0xff]  }
   0x4   :  { %471 = vmatprep.subr.bf16.mxu0 %v503_v1  ;;  %492 = vmatprep.subr.bf16.mxu1 %v503_v1 }
   0x5   :  { %475 = vmatprep.mubr.msk.bf16.mxu0 %vm101_vm1, %v505_v4  ;;  %483 = vmatprep.mubr.msk.bf16.mxu1 %vm101_vm1, %v506_v5 }
   0x7   :  { %472 = vmatpush3.bf16.msra.mxu0 %v503_v1  ;;  %495 = vmatpush3.bf16.msra.mxu1 %v503_v1 }
   0x8   :  { %473 = vmatprep.subr.bf16.mxu0 %v504_v3  ;;  %493 = vmatprep.subr.bf16.mxu1 %v504_v3 }
   0xb   :  { %474 = vmatpush3.bf16.msra.mxu0 %v504_v3  ;;  %496 = vmatpush3.bf16.msra.mxu1 %v504_v3 }
   0xc   :  { %10 = vsyncpa [#allocation3], 0  ;;  %v511_v10 = vld [vmem:[%s652_s0 + $0x18] sm:$0xff]   ;;  %v607_v12 = vld [vmem:[%s654_s2] ss:$0 sm:$0xff]  ;;  %s535_s14 = smov [#allocation2]  }
   0xd   :  { %v512_v11 = vld [vmem:[%s652_s0 + $0x38] sm:$0xff]   ;;  %s344_s15 = sshll.u32 %s535_s14, 4  ;;  %s345_s15 = int_to_ptr.vmem [resolvable:$true] %s344_s15 }
   0xe   :  { %476 = vmatmul.mubr.msk.bf16.vlgmr.msra.gmra.mxu0 %vm101_vm1, %v507_v6  ;;  %484 = vmatmul.mubr.msk.bf16.vlgmr.msra.gmra.mxu1 %vm101_vm1, %v508_v7  ;;  %s513_s20 = scalar_lea.vmem %s345_s15, 2048  ;;  %p518_p1 = scmp.lt.s32.totalorder %s345_s15, %s345_s15 }
   0xf   :  { %479 = vmatprep.mubr.msk.bf16.mxu0 %vm101_vm1, %v509_v8  ;;  %487 = vmatprep.mubr.msk.bf16.mxu1 %vm101_vm1, %v510_v9  ;;  %p514_p0 = scmp.ne.s32.totalorder %s345_s15, %s513_s20  ;;  %p519_p2 = scmp.lt.s32.totalorder %s513_s20, %s513_s20 }
  0x11   :  { %p520_p3 = por %p519_p2, %p518_p1 }
  0x13   :  { %p521_p4 = pnand %p520_p3, %p514_p0 }
  0x16   :  { %480 = vmatmul.mubr.msk.bf16.gmra.mxu0 %vm101_vm1, %v511_v10  ;;  %488 = vmatmul.mubr.msk.bf16.gmra.mxu1 %vm101_vm1, %v512_v11 }
  0xce   :  { %v477_v13 = vpop.f32.mrf.mxu0  ;;  %v485_v14 = vpop.f32.mrf.mxu1 }
  0xcf   :  { %v173_v15 = vadd.f32 %v477_v13, %v607_v12  ;;  %v205_v16 = vadd.f32 %v485_v14, %v607_v12 }
  0xd0   :  { %v164_v17 = vpop.f32.mrf.mxu0  ;;  %v196_v18 = vpop.f32.mrf.mxu1 }
  0xd1   :  { %229 = vst [vmem:[#allocation2 + $0x10] sm:$0xff] %v173_v15  ;;  %237 = vst [vmem:[#allocation2 + $0x50] sm:$0xff] %v205_v16  ;;  %v165_v19 = vadd.f32 %v607_v12, %v164_v17  ;;  %v197_v20 = vadd.f32 %v607_v12, %v196_v18  ;;  %v245_v25 = vmax.f32 %v173_v15, 0.0  ;;  %v253_v26 = vmax.f32 %v205_v16, 0.0 }
  0xd2   :  { %v478_v21 = vpop.f32.mrf.mxu0  ;;  %v486_v22 = vpop.f32.mrf.mxu1 }
  0xd3   :  { %227 = vst [vmem:[#allocation2] sm:$0xff] %v165_v19  ;;  %235 = vst [vmem:[#allocation2 + $0x40] sm:$0xff] %v197_v20  ;;  %v176_v23 = vadd.f32 %v478_v21, %v607_v12  ;;  %v208_v24 = vadd.f32 %v486_v22, %v607_v12  ;;  %v243_v33 = vmax.f32 %v165_v19, 0.0  ;;  %v251_v34 = vmax.f32 %v197_v20, 0.0 }
  0xd4   :  { %v167_v27 = vpop.f32.mrf.mxu0  ;;  %v199_v28 = vpop.f32.mrf.mxu1 }
  0xd5   :  { %230 = vst [vmem:[#allocation2 + $0x18] sm:$0xff] %v176_v23  ;;  %v246_v29 = vmax.f32 %v176_v23, 0.0  ;;  %238 = vst [vmem:[#allocation2 + $0x58] sm:$0xff] %v208_v24  ;;  %v254_v30 = vmax.f32 %v208_v24, 0.0  ;;  %v168_v31 = vadd.f32 %v607_v12, %v167_v27  ;;  %v200_v32 = vadd.f32 %v607_v12, %v199_v28 }
  0xd6   :  { %v481_v35 = vpop.f32.mrf.mxu0  ;;  %v489_v36 = vpop.f32.mrf.mxu1 }
  0xd7   :  { %v419_v37 = vpack.c.bf16 %v246_v29, %v245_v25  ;;  %v439_v38 = vpack.c.bf16 %v254_v30, %v253_v26  ;;  %228 = vst [vmem:[#allocation2 + $0x8] sm:$0xff] %v168_v31  ;;  %v244_v39 = vmax.f32 %v168_v31, 0.0  ;;  %236 = vst [vmem:[#allocation2 + $0x48] sm:$0xff] %v200_v32  ;;  %v252_v40 = vmax.f32 %v200_v32, 0.0 }
  0xd8   :  { %v189_v41 = vadd.f32 %v481_v35, %v607_v12  ;;  %v221_v42 = vadd.f32 %v489_v36, %v607_v12  ;;  %v180_v43 = vpop.f32.mrf.mxu0  ;;  %v212_v44 = vpop.f32.mrf.mxu1 }
  0xd9   :  { %451 = vst [vmem:[%s656_s4 + $0x8] sm:$0xff] %v419_v37   ;;  %455 = vst [vmem:[%s656_s4 + $0x28] sm:$0xff] %v439_v38   ;;  %v414_v45 = vpack.c.bf16 %v244_v39, %v243_v33  ;;  %v434_v46 = vpack.c.bf16 %v252_v40, %v251_v34  ;;  %v181_v47 = vadd.f32 %v607_v12, %v180_v43 }
  0xda   :  { %v213_v48 = vadd.f32 %v607_v12, %v212_v44  ;;  %233 = vst [vmem:[#allocation2 + $0x30] sm:$0xff] %v189_v41  ;;  %241 = vst [vmem:[#allocation2 + $0x70] sm:$0xff] %v221_v42  ;;  %v482_v49 = vpop.f32.mrf.mxu0  ;;  %v490_v50 = vpop.f32.mrf.mxu1  ;;  %v249_v53 = vmax.f32 %v189_v41, 0.0  ;;  %v257_v54 = vmax.f32 %v221_v42, 0.0 }
  0xdb   :  { %415 = vst [vmem:[%s656_s4] sm:$0xff] %v414_v45   ;;  %454 = vst [vmem:[%s656_s4 + $0x20] sm:$0xff] %v434_v46   ;;  %v192_v51 = vadd.f32 %v482_v49, %v607_v12  ;;  %v224_v52 = vadd.f32 %v490_v50, %v607_v12  ;;  %v247_v61 = vmax.f32 %v181_v47, 0.0 }
  0xdc   :  { %231 = vst [vmem:[#allocation2 + $0x20] sm:$0xff] %v181_v47  ;;  %239 = vst [vmem:[#allocation2 + $0x60] sm:$0xff] %v213_v48  ;;  %v183_v55 = vpop.f32.mrf.mxu0  ;;  %v215_v56 = vpop.f32.mrf.mxu1  ;;  %v255_v62 = vmax.f32 %v213_v48, 0.0 }
  0xdd   :  { %234 = vst [vmem:[#allocation2 + $0x38] sm:$0xff] %v192_v51  ;;  %v250_v57 = vmax.f32 %v192_v51, 0.0  ;;  %242 = vst [vmem:[#allocation2 + $0x78] sm:$0xff] %v224_v52  ;;  %v258_v58 = vmax.f32 %v224_v52, 0.0  ;;  %v184_v59 = vadd.f32 %v607_v12, %v183_v55  ;;  %v216_v60 = vadd.f32 %v607_v12, %v215_v56 }
  0xdf   :  { %v429_v63 = vpack.c.bf16 %v250_v57, %v249_v53  ;;  %v449_v0 = vpack.c.bf16 %v258_v58, %v257_v54  ;;  %232 = vst [vmem:[#allocation2 + $0x28] sm:$0xff] %v184_v59  ;;  %v248_v1 = vmax.f32 %v184_v59, 0.0  ;;  %240 = vst [vmem:[#allocation2 + $0x68] sm:$0xff] %v216_v60  ;;  %v256_v2 = vmax.f32 %v216_v60, 0.0 }
  0xe0   :  { %524 = shalt.err (!%p521_p4)
}
  0xe1   :  { %s536_s21 = smov 128   ;;  %s537_s22 = smov 8   ;;  %453 = vst [vmem:[%s656_s4 + $0x18] sm:$0xff] %v429_v63   ;;  %457 = vst [vmem:[%s656_s4 + $0x38] sm:$0xff] %v449_v0   ;;  %v424_v3 = vpack.c.bf16 %v248_v1, %v247_v61  ;;  %v444_v4 = vpack.c.bf16 %v256_v2, %v255_v62 }
  0xe2   :  { %350 = dma.vmem_to_hbm [thread:$0]  %s345_s15, 2048, %s655_s3, [#allocation3], %s536_s21, %s536_s21, %s537_s22  }
  0xe3   :  { %452 = vst [vmem:[%s656_s4 + $0x10] sm:$0xff] %v424_v3   ;;  %456 = vst [vmem:[%s656_s4 + $0x30] sm:$0xff] %v444_v4  }
  0xe4   :  { %533 = dma.done.wait [#allocation3], 2048  }
  0xe5   :  { %534 = vsyncadd [#allocation3], 4294965248 }
  0xe6   :  { %358 = vsyncpa [#allocation3], 1 }

// kernel: last_level_p6p7.3
= control target key start
LH: loop header
LB: loop body
LE: loop exit
PB: predicated region body
PF: predicated region fallthrough
CT: control target
= control target key end

     0   :  { %vm139_vm0 = vcmask 1043456   ;;  %vm114_vm1 = vcmask 588800   ;;  %s464_s1 = inlined_call_operand.vmem [shape: bf16[72,128], index: 1, kind: input, shape index: {}]   ;;  %s465_s0 = inlined_call_operand.vmem [shape: bf16[128,72], index: 0, kind: input, shape index: {}]   ;;  %s466_s2 = inlined_call_operand.vmem [shape: f32[1,128], index: 2, kind: input, shape index: {}]   ;;  %s467_s3 = inlined_call_operand.vmem [shape: f32[128,128], index: 3, kind: output, shape index: {}]  }
   0x1   :  { %v333_v0 = vld [vmem:[%s464_s1 + $0x20] ss:$0 sps:$4 sm:$0xff]   ;;  %v334_v1 = vld [vmem:[%s464_s1 + $0x18] sm:$0xff]   ;;  %v335_v3 = vld [vmem:[%s464_s1 + $0x10] sm:$0xff]  }
   0x2   :  { %331 = vmatprep.subr.msk.bf16.mxu0 %vm139_vm0, %v333_v0  ;;  %332 = vmatprep.subr.msk.bf16.mxu1 %vm139_vm0, %v333_v0  ;;  %v141_v2 = vsel %vm139_vm0, %v333_v0, 0  ;;  %v338_v4 = vld [vmem:[%s465_s0] sm:$0xff]   ;;  %v336_v6 = vld [vmem:[%s464_s1 + $0x8] sm:$0xff]   ;;  %v342_v10 = vld [vmem:[%s465_s0 + $0x10] sm:$0xff]  }
   0x3   :  { %296 = vmatpush3.bf16.msra.mxu0 %v141_v2  ;;  %326 = vmatpush3.bf16.msra.mxu1 %v141_v2  ;;  %v339_v5 = vld [vmem:[%s465_s0 + $0x20] sm:$0xff]   ;;  %v340_v8 = vld [vmem:[%s465_s0 + $0x8] sm:$0xff]   ;;  %v343_v11 = vld [vmem:[%s465_s0 + $0x30] sm:$0xff]  }
   0x4   :  { %297 = vmatprep.subr.bf16.mxu0 %v334_v1  ;;  %322 = vmatprep.subr.bf16.mxu1 %v334_v1  ;;  %v337_v7 = vld [vmem:[%s464_s1] sm:$0xff]   ;;  %v341_v9 = vld [vmem:[%s465_s0 + $0x28] sm:$0xff]   ;;  %v344_v12 = vld [vmem:[%s465_s0 + $0x18] sm:$0xff]  }
   0x5   :  { %305 = vmatprep.mubr.msk.bf16.mxu0 %vm114_vm1, %v338_v4  ;;  %313 = vmatprep.mubr.msk.bf16.mxu1 %vm114_vm1, %v339_v5  ;;  %v345_v13 = vld [vmem:[%s465_s0 + $0x38] sm:$0xff]   ;;  %v260_v14 = vld [vmem:[%s466_s2] ss:$0 sm:$0xff] }
   0x7   :  { %298 = vmatpush3.bf16.msra.mxu0 %v334_v1  ;;  %327 = vmatpush3.bf16.msra.mxu1 %v334_v1 }
   0x8   :  { %299 = vmatprep.subr.bf16.mxu0 %v335_v3  ;;  %323 = vmatprep.subr.bf16.mxu1 %v335_v3 }
   0xb   :  { %300 = vmatpush3.bf16.msra.mxu0 %v335_v3  ;;  %328 = vmatpush3.bf16.msra.mxu1 %v335_v3 }
   0xc   :  { %301 = vmatprep.subr.bf16.mxu0 %v336_v6  ;;  %324 = vmatprep.subr.bf16.mxu1 %v336_v6 }
   0xf   :  { %302 = vmatpush3.bf16.msra.mxu0 %v336_v6  ;;  %329 = vmatpush3.bf16.msra.mxu1 %v336_v6 }
  0x10   :  { %303 = vmatprep.subr.bf16.mxu0 %v337_v7  ;;  %325 = vmatprep.subr.bf16.mxu1 %v337_v7 }
  0x13   :  { %304 = vmatpush3.bf16.msra.mxu0 %v337_v7  ;;  %330 = vmatpush3.bf16.msra.mxu1 %v337_v7 }
  0x16   :  { %306 = vmatmul.mubr.msk.bf16.vlgmr.msra.gmra.mxu0 %vm114_vm1, %v340_v8  ;;  %314 = vmatmul.mubr.msk.bf16.vlgmr.msra.gmra.mxu1 %vm114_vm1, %v341_v9 }
  0x17   :  { %309 = vmatprep.mubr.msk.bf16.mxu0 %vm114_vm1, %v342_v10  ;;  %317 = vmatprep.mubr.msk.bf16.mxu1 %vm114_vm1, %v343_v11 }
  0x1e   :  { %310 = vmatmul.mubr.msk.bf16.gmra.mxu0 %vm114_vm1, %v344_v12  ;;  %318 = vmatmul.mubr.msk.bf16.gmra.mxu1 %vm114_vm1, %v345_v13 }
  0xd6   :  { %v307_v15 = vpop.f32.mrf.mxu0  ;;  %v315_v16 = vpop.f32.mrf.mxu1 }
  0xd7   :  { %v186_v17 = vadd.f32 %v307_v15, %v260_v14  ;;  %v218_v18 = vadd.f32 %v315_v16, %v260_v14 }
  0xd8   :  { %v177_v19 = vpop.f32.mrf.mxu0  ;;  %v209_v20 = vpop.f32.mrf.mxu1 }
  0xd9   :  { %242 = vst [vmem:[%s467_s3 + $0x10] sm:$0xff] %v186_v17  ;;  %250 = vst [vmem:[%s467_s3 + $0x50] sm:$0xff] %v218_v18  ;;  %v178_v21 = vadd.f32 %v260_v14, %v177_v19  ;;  %v210_v22 = vadd.f32 %v260_v14, %v209_v20 }
  0xda   :  { %v308_v23 = vpop.f32.mrf.mxu0  ;;  %v316_v24 = vpop.f32.mrf.mxu1 }
  0xdb   :  { %240 = vst [vmem:[%s467_s3] sm:$0xff] %v178_v21  ;;  %248 = vst [vmem:[%s467_s3 + $0x40] sm:$0xff] %v210_v22  ;;  %v189_v25 = vadd.f32 %v308_v23, %v260_v14  ;;  %v221_v26 = vadd.f32 %v316_v24, %v260_v14 }
  0xdc   :  { %v180_v27 = vpop.f32.mrf.mxu0  ;;  %v212_v28 = vpop.f32.mrf.mxu1 }
  0xdd   :  { %243 = vst [vmem:[%s467_s3 + $0x18] sm:$0xff] %v189_v25  ;;  %251 = vst [vmem:[%s467_s3 + $0x58] sm:$0xff] %v221_v26  ;;  %v181_v29 = vadd.f32 %v260_v14, %v180_v27  ;;  %v213_v30 = vadd.f32 %v260_v14, %v212_v28 }
  0xde   :  { %v311_v31 = vpop.f32.mrf.mxu0  ;;  %v319_v32 = vpop.f32.mrf.mxu1 }
  0xdf   :  { %241 = vst [vmem:[%s467_s3 + $0x8] sm:$0xff] %v181_v29  ;;  %249 = vst [vmem:[%s467_s3 + $0x48] sm:$0xff] %v213_v30  ;;  %v202_v33 = vadd.f32 %v311_v31, %v260_v14  ;;  %v234_v34 = vadd.f32 %v319_v32, %v260_v14 }
  0xe0   :  { %v193_v35 = vpop.f32.mrf.mxu0  ;;  %v225_v36 = vpop.f32.mrf.mxu1 }
  0xe1   :  { %246 = vst [vmem:[%s467_s3 + $0x30] sm:$0xff] %v202_v33  ;;  %254 = vst [vmem:[%s467_s3 + $0x70] sm:$0xff] %v234_v34  ;;  %v194_v37 = vadd.f32 %v260_v14, %v193_v35  ;;  %v226_v38 = vadd.f32 %v260_v14, %v225_v36 }
  0xe2   :  { %v312_v39 = vpop.f32.mrf.mxu0  ;;  %v320_v40 = vpop.f32.mrf.mxu1 }
  0xe3   :  { %244 = vst [vmem:[%s467_s3 + $0x20] sm:$0xff] %v194_v37  ;;  %252 = vst [vmem:[%s467_s3 + $0x60] sm:$0xff] %v226_v38  ;;  %v205_v41 = vadd.f32 %v312_v39, %v260_v14  ;;  %v237_v42 = vadd.f32 %v320_v40, %v260_v14 }
  0xe4   :  { %v196_v43 = vpop.f32.mrf.mxu0  ;;  %v228_v44 = vpop.f32.mrf.mxu1 }
  0xe5   :  { %247 = vst [vmem:[%s467_s3 + $0x38] sm:$0xff] %v205_v41  ;;  %255 = vst [vmem:[%s467_s3 + $0x78] sm:$0xff] %v237_v42  ;;  %v197_v45 = vadd.f32 %v260_v14, %v196_v43  ;;  %v229_v46 = vadd.f32 %v260_v14, %v228_v44 }
  0xe7   :  { %245 = vst [vmem:[%s467_s3 + $0x28] sm:$0xff] %v197_v45  ;;  %253 = vst [vmem:[%s467_s3 + $0x68] sm:$0xff] %v229_v46 }

</bundles_post_ra>
